<compile_context>
chip_gen: v6e
topology: v6e:2x2x1
jax: 0.10.0
libtpu: 0.0.40
codegen_flags: <defaults>
</compile_context>

<pallas_src>
import functools

import jax
import jax.numpy as jnp
from jax.experimental import pallas as pl
from jax.experimental.pallas import tpu as pltpu


def _round_up(n, m):
    return ((n + m - 1) // m) * m


def _tcn_kernel(x_ref, w1_ref, b1_ref, w2_ref, b2_ref, o_ref, *, activation):
    # x / weights arrive already in the compute dtype (bf16 or f32): no upcasts here.
    x = x_ref[...]                                                     # (tile_rows, Cp)
    h = jnp.dot(x, w1_ref[...], preferred_element_type=jnp.float32) + b1_ref[...]
    if activation == "relu":
        h = jnp.maximum(h, 0.0)
    else:
        # torch F.gelu default is the exact (erf) formulation.
        # (approximate=True would run on the EUP and be cheaper, but changes numerics.)
        h = jax.nn.gelu(h, approximate=False)
    h = h.astype(w2_ref.dtype)                                         # compute dtype for MXU
    y = jnp.dot(h, w2_ref[...], preferred_element_type=jnp.float32) + b2_ref[...]
    o_ref[...] = y.astype(o_ref.dtype)


def _vmem_usable_bytes():
    """Per-generation usable VMEM (capacity minus compiler-scratch headroom)."""
    try:
        cap = int(pltpu.get_tpu_info().vmem_capacity_bytes)
    except Exception:
        cap = 64 << 20  # conservative fallback: v7x per-TC capacity
    # ~105-110 MiB on v5e/v6e (128 MiB physical), ~52 MiB on v7x (64 MiB physical).
    return max(32 << 20, int(cap * 0.82))


def tcn_pallas(x, w1, b1, w2, b2, *, activation="relu", tile_rows=None):
    """TCN forward (inference).

    x      : (..., C) channel-last (the layout the torch module receives *before*
             its internal transpose(-1, 1)); C = d_model.
    w1, w2 : (C, C) 1x1 conv weights (kernel dims squeezed, torch (C_out, C_in)).
    b1, b2 : (C,) biases.
    """
    if activation not in ("relu", "gelu"):
        raise ValueError(f"unsupported activation: {activation!r}")
    # TODO(synk): training-mode dropout (RNG masking) is not implemented; this
    # kernel reproduces the module in eval mode (dropout = identity).

    orig_shape = x.shape
    C = orig_shape[-1]
    x2 = x.reshape(-1, C)
    R = x2.shape[0]

    # MXU-native compute dtype: keep bf16 operands, otherwise compute in f32.
    compute_dtype = jnp.bfloat16 if x.dtype == jnp.bfloat16 else jnp.float32
    if x2.dtype != compute_dtype:
        x2 = x2.astype(compute_dtype)

    # Lane-dense channels: pad d_model to a multiple of 128 once in the wrapper.
    Cp = _round_up(C, 128)
    if Cp != C:
        x2 = jnp.pad(x2, ((0, 0), (0, Cp - C)))

    def _prep_w(w):
        wt = jnp.asarray(w).reshape(C, C).T.astype(compute_dtype)     # (in, out)
        if Cp != C:
            wt = jnp.pad(wt, ((0, Cp - C), (0, Cp - C)))
        return wt

    def _prep_b(b):
        bb = jnp.asarray(b).reshape(1, C).astype(jnp.float32)         # bias add stays f32
        if Cp != C:
            bb = jnp.pad(bb, ((0, 0), (0, Cp - C)))
        return bb

    w1p, w2p = _prep_w(w1), _prep_w(w2)
    b1p, b2p = _prep_b(b1), _prep_b(b2)

    x_bytes = jnp.dtype(compute_dtype).itemsize
    out_bytes = jnp.dtype(x.dtype).itemsize
    sub = 16 if compute_dtype == jnp.bfloat16 else 8

    # --- VMEM accounting (worst case: double-buffered weights) ------------------
    usable = _vmem_usable_bytes()
    fixed = 2 * (2 * Cp * Cp * x_bytes) + 2 * (2 * Cp * 4)             # W1,W2 (dbl-buf) + biases
    per_row = Cp * (2 * x_bytes + 2 * out_bytes + 3 * 4)               # dbl-buf x/out + ~3 f32 temps
    headroom = 4 << 20
    avail = usable - fixed - headroom
    if avail < per_row * sub:
        # TODO(synk): d_model too large for VMEM-resident weights; a K/N-tiled 2D
        # grid with an accumulator would be needed. Fall back to the minimum tile.
        avail = per_row * sub

    if tile_rows is None:
        tr = int(min(2048, avail // per_row))
        tr = (tr // 256) * 256 if tr >= 256 else max(sub, (tr // sub) * sub)
        # Keep >= ~8 grid steps for large R (DMA pipelining, both v7x TensorCores).
        if R >= 8 * 256:
            tr = min(tr, max(256, _round_up(pl.cdiv(R, 8), 256)))
        tile_rows = tr
    tile_rows = _round_up(int(tile_rows), sub)
    tile_rows = max(sub, min(tile_rows, _round_up(R, sub)))

    # No row padding: Pallas masks the ragged last block's edge writes.
    grid = (pl.cdiv(R, tile_rows),)

    vmem_bytes = fixed + tile_rows * per_row + headroom
    vmem_bytes = int(min(max(vmem_bytes, 16 << 20), usable))

    cost = pl.CostEstimate(
        flops=int(4 * R * Cp * Cp),
        transcendentals=int(R * Cp) if activation == "gelu" else 0,
        bytes_accessed=int(R * Cp * (x_bytes + out_bytes) + 2 * Cp * Cp * x_bytes + 2 * Cp * 4),
    )

    kernel = functools.partial(_tcn_kernel, activation=activation)
    out_shape = jax.ShapeDtypeStruct((R, Cp), x.dtype)

    def _call(single_buffer_weights):
        const_kw = {}
        if single_buffer_weights:
            # Grid-invariant operands: one VMEM buffer instead of two.
            const_kw = dict(pipeline_mode=pl.Buffered(1))
        return pl.pallas_call(
            kernel,
            out_shape=out_shape,
            grid_spec=pl.GridSpec(
                grid=grid,
                in_specs=[
                    pl.BlockSpec((tile_rows, Cp), lambda i: (i, 0)),           # x rows
                    pl.BlockSpec((Cp, Cp), lambda i: (0, 0), **const_kw),      # W1^T (resident)
                    pl.BlockSpec((1, Cp), lambda i: (0, 0), **const_kw),       # b1
                    pl.BlockSpec((Cp, Cp), lambda i: (0, 0), **const_kw),      # W2^T (resident)
                    pl.BlockSpec((1, Cp), lambda i: (0, 0), **const_kw),       # b2
                ],
                out_specs=pl.BlockSpec((tile_rows, Cp), lambda i: (i, 0)),
            ),
            compiler_params=pltpu.CompilerParams(
                dimension_semantics=("parallel",),
                vmem_limit_bytes=vmem_bytes,
            ),
            cost_estimate=cost,
        )(x2, w1p, b1p, w2p, b2p)

    try:
        out = _call(hasattr(pl, "Buffered"))
    except Exception:
        # Older jax without pipeline_mode / Buffered(1): default double buffering.
        out = _call(False)

    if Cp != C:
        out = out[:, :C]
    return out.reshape(orig_shape)


def tcn_ref(x, w1, b1, w2, b2, activation="relu"):
    """Pure-JAX reference matching the torch TCN forward (eval mode)."""
    xf = x.astype(jnp.float32)
    h = jnp.einsum("...c,oc->...o", xf, jnp.asarray(w1, jnp.float32)) + jnp.asarray(b1, jnp.float32)
    if activation == "relu":
        h = jnp.maximum(h, 0.0)
    else:
        h = jax.nn.gelu(h, approximate=False)
    y = jnp.einsum("...c,oc->...o", h, jnp.asarray(w2, jnp.float32)) + jnp.asarray(b2, jnp.float32)
    return y.astype(x.dtype)


if __name__ == "__main__":
    key = jax.random.PRNGKey(0)
    # x as the torch module sees it before its transpose(-1, 1):
    # (batch, spatial1, spatial2, d_model)
    B, S1, S2, D = 2, 4, 8, 32
    k1, k2, k3, k4, k5 = jax.random.split(key, 5)
    x = jax.random.normal(k1, (B, S1, S2, D), dtype=jnp.float32)
    w1 = jax.random.normal(k2, (D, D), dtype=jnp.float32) * 0.1   # conv1.weight[:, :, 0, 0]
    b1 = jax.random.normal(k3, (D,), dtype=jnp.float32) * 0.1     # conv1.bias
    w2 = jax.random.normal(k4, (D, D), dtype=jnp.float32) * 0.1   # conv2.weight[:, :, 0, 0]
    b2 = jax.random.normal(k5, (D,), dtype=jnp.float32) * 0.1     # conv2.bias

    # 1) f32 path.
    out = jax.block_until_ready(tcn_pallas(x, w1, b1, w2, b2, activation="relu"))
    ref = tcn_ref(x, w1, b1, w2, b2, "relu")
    assert out.shape == x.shape and out.dtype == x.dtype
    assert jnp.allclose(out, ref, atol=1e-4, rtol=1e-4)

    # 2) ragged row grid (R % tile_rows != 0) -> exercises the masked edge block.
    xr = jax.random.normal(k1, (3, 5, 7, D), dtype=jnp.float32)
    out_r = jax.block_until_ready(tcn_pallas(xr, w1, b1, w2, b2, activation="relu", tile_rows=16))
    ref_r = tcn_ref(xr, w1, b1, w2, b2, "relu")
    assert out_r.shape == xr.shape
    assert jnp.allclose(out_r, ref_r, atol=1e-4, rtol=1e-4)

    # 3) bf16 fast path (MXU-native operands, f32 accumulation).
    xb = x.astype(jnp.bfloat16)
    out_b = jax.block_until_ready(tcn_pallas(xb, w1, b1, w2, b2, activation="relu"))
    ref_b = tcn_ref(xb, w1, b1, w2, b2, "relu")
    assert out_b.dtype == jnp.bfloat16
    assert jnp.allclose(out_b.astype(jnp.float32), ref_b.astype(jnp.float32), atol=5e-2, rtol=5e-2)

    print("KERNEL_OK")
</pallas_src>

<mosaic_0001>
module attributes {stable_mosaic.version = 11 : i64} {
  func.func @_tcn_kernel(%arg0: i32, %arg1: memref<64x128xf32, #tpu.memory_space<vmem>>, %arg2: memref<128x128xf32, #tpu.memory_space<vmem>>, %arg3: memref<1x128xf32, #tpu.memory_space<vmem>>, %arg4: memref<128x128xf32, #tpu.memory_space<vmem>>, %arg5: memref<1x128xf32, #tpu.memory_space<vmem>>, %arg6: memref<64x128xf32, #tpu.memory_space<vmem>>) attributes {dimension_semantics = [#tpu.dimension_semantics<parallel>], iteration_bounds = array<i64: 1>, scalar_prefetch = 0 : i64, scratch_operands = 0 : i64, tpu.core_type = #tpu.core_type<tc>, window_params = [{transform_indices = @transform_0, window_bounds = array<i64: 64, 128>}, {pipeline_mode = #tpu.pipeline_mode<synchronous>, transform_indices = @transform_1, window_bounds = array<i64: 128, 128>}, {pipeline_mode = #tpu.pipeline_mode<synchronous>, transform_indices = @transform_2, window_bounds = array<i64: 1, 128>}, {pipeline_mode = #tpu.pipeline_mode<synchronous>, transform_indices = @transform_3, window_bounds = array<i64: 128, 128>}, {pipeline_mode = #tpu.pipeline_mode<synchronous>, transform_indices = @transform_4, window_bounds = array<i64: 1, 128>}, {transform_indices = @transform_5, window_bounds = array<i64: 64, 128>}]} {
    %c0 = arith.constant 0 : index
    %c0_0 = arith.constant 0 : index
    %0 = vector.load %arg1[%c0, %c0_0] : memref<64x128xf32, #tpu.memory_space<vmem>>, vector<64x128xf32>
    %c0_1 = arith.constant 0 : index
    %c0_2 = arith.constant 0 : index
    %1 = vector.load %arg2[%c0_1, %c0_2] : memref<128x128xf32, #tpu.memory_space<vmem>>, vector<128x128xf32>
    %cst = arith.constant dense<0.000000e+00> : vector<64x128xf32>
    %2 = tpu.matmul %0, %1, %cst {dimension_numbers = #tpu.dot_dimension_numbers<[1], [0], [0], [1], [0, 0, 1, 1], [], []>} : vector<64x128xf32>, vector<128x128xf32>, vector<64x128xf32> -> vector<64x128xf32>
    %c0_3 = arith.constant 0 : index
    %c0_4 = arith.constant 0 : index
    %3 = vector.load %arg3[%c0_3, %c0_4] : memref<1x128xf32, #tpu.memory_space<vmem>>, vector<1x128xf32>
    %4 = vector.broadcast %3 : vector<1x128xf32> to vector<64x128xf32>
    %5 = arith.addf %2, %4 : vector<64x128xf32>
    %cst_5 = arith.constant 0.000000e+00 : f32
    %6 = vector.broadcast %cst_5 : f32 to vector<64x128xf32>
    %7 = arith.maximumf %5, %6 : vector<64x128xf32>
    %c0_6 = arith.constant 0 : index
    %c0_7 = arith.constant 0 : index
    %8 = vector.load %arg4[%c0_6, %c0_7] : memref<128x128xf32, #tpu.memory_space<vmem>>, vector<128x128xf32>
    %cst_8 = arith.constant dense<0.000000e+00> : vector<64x128xf32>
    %9 = tpu.matmul %7, %8, %cst_8 {dimension_numbers = #tpu.dot_dimension_numbers<[1], [0], [0], [1], [0, 0, 1, 1], [], []>} : vector<64x128xf32>, vector<128x128xf32>, vector<64x128xf32> -> vector<64x128xf32>
    %c0_9 = arith.constant 0 : index
    %c0_10 = arith.constant 0 : index
    %10 = vector.load %arg5[%c0_9, %c0_10] : memref<1x128xf32, #tpu.memory_space<vmem>>, vector<1x128xf32>
    %11 = vector.broadcast %10 : vector<1x128xf32> to vector<64x128xf32>
    %12 = arith.addf %9, %11 : vector<64x128xf32>
    %c0_11 = arith.constant 0 : index
    %c0_12 = arith.constant 0 : index
    %13 = vector.load %arg6[%c0_11, %c0_12] : memref<64x128xf32, #tpu.memory_space<vmem>>, vector<64x128xf32>
    tpu.vector_store %arg6[%c0_11, %c0_12], %12 {strides = array<i32>} : memref<64x128xf32, #tpu.memory_space<vmem>>, vector<64x128xf32>,
    return
  }
  func.func @transform_0(%arg0: i32) -> (i32, i32) {
    %c0_i32 = arith.constant 0 : i32
    %c0_i32_0 = arith.constant 0 : i32
    return %arg0, %c0_i32 : i32, i32
  }
  func.func @transform_1(%arg0: i32) -> (i32, i32) {
    %c0_i32 = arith.constant 0 : i32
    %c0_i32_0 = arith.constant 0 : i32
    %c0_i32_1 = arith.constant 0 : i32
    return %c0_i32, %c0_i32_0 : i32, i32
  }
  func.func @transform_2(%arg0: i32) -> (i32, i32) {
    %c0_i32 = arith.constant 0 : i32
    %c0_i32_0 = arith.constant 0 : i32
    %c0_i32_1 = arith.constant 0 : i32
    return %c0_i32, %c0_i32_0 : i32, i32
  }
  func.func @transform_3(%arg0: i32) -> (i32, i32) {
    %c0_i32 = arith.constant 0 : i32
    %c0_i32_0 = arith.constant 0 : i32
    %c0_i32_1 = arith.constant 0 : i32
    return %c0_i32, %c0_i32_0 : i32, i32
  }
  func.func @transform_4(%arg0: i32) -> (i32, i32) {
    %c0_i32 = arith.constant 0 : i32
    %c0_i32_0 = arith.constant 0 : i32
    %c0_i32_1 = arith.constant 0 : i32
    return %c0_i32, %c0_i32_0 : i32, i32
  }
  func.func @transform_5(%arg0: i32) -> (i32, i32) {
    %c0_i32 = arith.constant 0 : i32
    %c0_i32_0 = arith.constant 0 : i32
    return %arg0, %c0_i32 : i32, i32
  }
}

module attributes {stable_mosaic.version = 11 : i64} {
  func.func @_tcn_kernel(%arg0: i32, %arg1: memref<64x128xf32, #tpu.memory_space<vmem>>, %arg2: memref<128x128xf32, #tpu.memory_space<vmem>>, %arg3: memref<1x128xf32, #tpu.memory_space<vmem>>, %arg4: memref<128x128xf32, #tpu.memory_space<vmem>>, %arg5: memref<1x128xf32, #tpu.memory_space<vmem>>, %arg6: memref<64x128xf32, #tpu.memory_space<vmem>>) attributes {dimension_semantics = [#tpu.dimension_semantics<parallel>], iteration_bounds = array<i64: 1>, scalar_prefetch = 0 : i64, scratch_operands = 0 : i64, tpu.core_type = #tpu.core_type<tc>, window_params = [{transform_indices = @transform_0, window_bounds = array<i64: 64, 128>}, {pipeline_mode = #tpu.pipeline_mode<synchronous>, transform_indices = @transform_1, window_bounds = array<i64: 128, 128>}, {pipeline_mode = #tpu.pipeline_mode<synchronous>, transform_indices = @transform_2, window_bounds = array<i64: 1, 128>}, {pipeline_mode = #tpu.pipeline_mode<synchronous>, transform_indices = @transform_3, window_bounds = array<i64: 128, 128>}, {pipeline_mode = #tpu.pipeline_mode<synchronous>, transform_indices = @transform_4, window_bounds = array<i64: 1, 128>}, {transform_indices = @transform_5, window_bounds = array<i64: 64, 128>}]} {
    %c0 = arith.constant 0 : index
    %c0_0 = arith.constant 0 : index
    %0 = vector.load %arg1[%c0, %c0_0] : memref<64x128xf32, #tpu.memory_space<vmem>>, vector<64x128xf32>
    %c0_1 = arith.constant 0 : index
    %c0_2 = arith.constant 0 : index
    %1 = vector.load %arg2[%c0_1, %c0_2] : memref<128x128xf32, #tpu.memory_space<vmem>>, vector<128x128xf32>
    %cst = arith.constant dense<0.000000e+00> : vector<64x128xf32>
    %2 = tpu.matmul %0, %1, %cst {dimension_numbers = #tpu.dot_dimension_numbers<[1], [0], [0], [1], [0, 0, 1, 1], [], []>} : vector<64x128xf32>, vector<128x128xf32>, vector<64x128xf32> -> vector<64x128xf32>
    %c0_3 = arith.constant 0 : index
    %c0_4 = arith.constant 0 : index
    %3 = vector.load %arg3[%c0_3, %c0_4] : memref<1x128xf32, #tpu.memory_space<vmem>>, vector<1x128xf32>
    %4 = vector.broadcast %3 : vector<1x128xf32> to vector<64x128xf32>
    %5 = arith.addf %2, %4 : vector<64x128xf32>
    %cst_5 = arith.constant 0.000000e+00 : f32
    %6 = vector.broadcast %cst_5 : f32 to vector<64x128xf32>
    %7 = arith.maximumf %5, %6 : vector<64x128xf32>
    %c0_6 = arith.constant 0 : index
    %c0_7 = arith.constant 0 : index
    %8 = vector.load %arg4[%c0_6, %c0_7] : memref<128x128xf32, #tpu.memory_space<vmem>>, vector<128x128xf32>
    %cst_8 = arith.constant dense<0.000000e+00> : vector<64x128xf32>
    %9 = tpu.matmul %7, %8, %cst_8 {dimension_numbers = #tpu.dot_dimension_numbers<[1], [0], [0], [1], [0, 0, 1, 1], [], []>} : vector<64x128xf32>, vector<128x128xf32>, vector<64x128xf32> -> vector<64x128xf32>
    %c0_9 = arith.constant 0 : index
    %c0_10 = arith.constant 0 : index
    %10 = vector.load %arg5[%c0_9, %c0_10] : memref<1x128xf32, #tpu.memory_space<vmem>>, vector<1x128xf32>
    %11 = vector.broadcast %10 : vector<1x128xf32> to vector<64x128xf32>
    %12 = arith.addf %9, %11 : vector<64x128xf32>
    %c0_11 = arith.constant 0 : index
    %c0_12 = arith.constant 0 : index
    %13 = vector.load %arg6[%c0_11, %c0_12] : memref<64x128xf32, #tpu.memory_space<vmem>>, vector<64x128xf32>
    tpu.vector_store %arg6[%c0_11, %c0_12], %12 {strides = array<i32>} : memref<64x128xf32, #tpu.memory_space<vmem>>, vector<64x128xf32>,
    return
  }
  func.func @transform_0(%arg0: i32) -> (i32, i32) {
    %c0_i32 = arith.constant 0 : i32
    %c0_i32_0 = arith.constant 0 : i32
    return %arg0, %c0_i32 : i32, i32
  }
  func.func @transform_1(%arg0: i32) -> (i32, i32) {
    %c0_i32 = arith.constant 0 : i32
    %c0_i32_0 = arith.constant 0 : i32
    %c0_i32_1 = arith.constant 0 : i32
    return %c0_i32, %c0_i32_0 : i32, i32
  }
  func.func @transform_2(%arg0: i32) -> (i32, i32) {
    %c0_i32 = arith.constant 0 : i32
    %c0_i32_0 = arith.constant 0 : i32
    %c0_i32_1 = arith.constant 0 : i32
    return %c0_i32, %c0_i32_0 : i32, i32
  }
  func.func @transform_3(%arg0: i32) -> (i32, i32) {
    %c0_i32 = arith.constant 0 : i32
    %c0_i32_0 = arith.constant 0 : i32
    %c0_i32_1 = arith.constant 0 : i32
    return %c0_i32, %c0_i32_0 : i32, i32
  }
  func.func @transform_4(%arg0: i32) -> (i32, i32) {
    %c0_i32 = arith.constant 0 : i32
    %c0_i32_0 = arith.constant 0 : i32
    %c0_i32_1 = arith.constant 0 : i32
    return %c0_i32, %c0_i32_0 : i32, i32
  }
  func.func @transform_5(%arg0: i32) -> (i32, i32) {
    %c0_i32 = arith.constant 0 : i32
    %c0_i32_0 = arith.constant 0 : i32
    return %arg0, %c0_i32 : i32, i32
  }
}

</mosaic_0001>

<bundles_post_ra>
// kernel: tpu_custom_call.1
= control target key start
LH: loop header
LB: loop body
LE: loop exit
PB: predicated region body
PF: predicated region fallthrough
CT: control target
= control target key end

     0   :  { %10 = vsyncpa [#allocation3], 0  ;;  %s656_s0 = inlined_call_operand.hbm [shape: f32[64,128], index: 0, kind: input, shape index: {}]   ;;  %s657_s1 = inlined_call_operand.hbm [shape: f32[128,128], index: 1, kind: input, shape index: {}]   ;;  %s658_s2 = inlined_call_operand.vmem [shape: f32[1,128], index: 2, kind: input, shape index: {}]   ;;  %s659_s3 = inlined_call_operand.hbm [shape: f32[128,128], index: 3, kind: input, shape index: {}]   ;;  %s660_s4 = inlined_call_operand.vmem [shape: f32[1,128], index: 4, kind: input, shape index: {}]   ;;  %s661_s5 = inlined_call_operand.hbm [shape: f32[64,128], index: 5, kind: output, shape index: {}]  }
   0x1   :  { %11 = vsyncpa [#allocation6], 0 }
   0x2   :  { %12 = vsyncpa [#allocation4], 0  ;;  %s590_s18 = smov [#allocation5]   ;;  %s591_s20 = smov [#allocation2]  }
   0x3   :  { %s30_s19 = sshll.u32 %s590_s18, 4  ;;  %s18_s21 = sshll.u32 %s591_s20, 4  ;;  %s31_s19 = int_to_ptr.vmem [resolvable:$true] %s30_s19  ;;  %s19_s21 = int_to_ptr.vmem [resolvable:$true] %s18_s21 }
   0x4   :  { %s512_s22 = scalar_lea.vmem %s31_s19, 2048  ;;  %p517_p1 = scmp.lt.s32.totalorder %s31_s19, %s31_s19 }
   0x5   :  { %p513_p0 = scmp.ne.s32.totalorder %s31_s19, %s512_s22  ;;  %p518_p2 = scmp.lt.s32.totalorder %s512_s22, %s512_s22 }
   0x7   :  { %p519_p3 = por %p518_p2, %p517_p1 }
   0x9   :  { %p520_p4 = pnand %p519_p3, %p513_p0 }
   0xb   :  { %523 = shalt.err (!%p520_p4)
}
   0xc   :  { %s592_s23 = smov 128   ;;  %s593_s24 = smov 8  }
   0xd   :  { %36 = dma.hbm_to_vmem [thread:$0]  %s657_s1, 2048, %s31_s19, [#allocation6], %s592_s23, %s592_s23, %s593_s24  }
   0xe   :  { %s532_s27 = scalar_lea.vmem %s19_s21, 1024  ;;  %p537_p6 = scmp.lt.s32.totalorder %s19_s21, %s19_s21 }
   0xf   :  { %p533_p5 = scmp.ne.s32.totalorder %s19_s21, %s532_s27  ;;  %p538_p7 = scmp.lt.s32.totalorder %s532_s27, %s532_s27 }
  0x11   :  { %p539_p8 = por %p538_p7, %p537_p6 }
  0x13   :  { %p540_p9 = pnand %p539_p8, %p533_p5 }
  0x15   :  { %543 = shalt.err (!%p540_p9)
}
  0x16   :  { %24 = dma.hbm_to_vmem [thread:$0]  %s656_s0, 1024, %s19_s21, [#allocation3], %s592_s23, %s592_s23, %s593_s24  }
  0x17   :  { %s594_s30 = smov [#allocation7]  }
  0x18   :  { %s44_s6 = sshll.u32 %s594_s30, 4  ;;  %s45_s6 = int_to_ptr.vmem [resolvable:$true] %s44_s6 }
  0x19   :  { %s552_s7 = scalar_lea.vmem %s45_s6, 2048  ;;  %p557_p11 = scmp.lt.s32.totalorder %s45_s6, %s45_s6 }
  0x1a   :  { %p553_p10 = scmp.ne.s32.totalorder %s45_s6, %s552_s7  ;;  %p558_p12 = scmp.lt.s32.totalorder %s552_s7, %s552_s7 }
  0x1c   :  { %p559_p13 = por %p558_p12, %p557_p11 }
  0x1e   :  { %p560_p0 = pnand %p559_p13, %p553_p10 }
  0x20   :  { %563 = shalt.err (!%p560_p0)
}
  0x21   :  { %50 = dma.hbm_to_vmem [thread:$0]  %s659_s3, 2048, %s45_s6, [#allocation6], %s592_s23, %s592_s23, %s593_s24  }
  0x22   :  { %584 = dma.done.wait [#allocation3], 1024  }
  0x23   :  { %585 = vsyncadd [#allocation3], 4294966272 }
  0x24   :  { %586 = dma.done.wait [#allocation6], 4096  }
  0x25   :  { %587 = vsyncadd [#allocation6], 4294963200  ;;  %v85_v0 = vld [vmem:[#allocation5 + $0x78] sm:$0xff]  ;;  %v84_v1 = vld [vmem:[#allocation5 + $0x70] sm:$0xff]  ;;  %s595_s10 = smov [#allocation8]  }
  0x26   :  { %410 = vmatprep.subr.mxu0 %v85_v0  ;;  %v83_v2 = vld [vmem:[#allocation5 + $0x68] sm:$0xff]  ;;  %v82_v3 = vld [vmem:[#allocation5 + $0x60] sm:$0xff]  ;;  %v81_v5 = vld [vmem:[#allocation5 + $0x58] sm:$0xff] }
  0x27   :  { %411 = vmatpush3.msra.mxu0 %v85_v0  ;;  %v62_v4 = vld [vmem:[#allocation2] sm:$0xff]  ;;  %v80_v6 = vld [vmem:[#allocation5 + $0x50] sm:$0xff]  ;;  %v221_v7 = vld [vmem:[#allocation7 + $0x78] sm:$0xff] }
  0x28   :  { %412 = vmatprep.subr.mxu0 %v84_v1  ;;  %442 = vmatprep.mubr.f32.mxu0 %v62_v4  ;;  %v220_v8 = vld [vmem:[#allocation7 + $0x70] sm:$0xff]  ;;  %v79_v9 = vld [vmem:[#allocation5 + $0x48] sm:$0xff]  ;;  %v78_v11 = vld [vmem:[#allocation5 + $0x40] sm:$0xff] }
  0x29   :  { %413 = vmatpush3.msra.mxu0 %v84_v1  ;;  %454 = vmatprep.subr.mxu1 %v221_v7  ;;  %v219_v10 = vld [vmem:[#allocation7 + $0x68] sm:$0xff]  ;;  %v218_v12 = vld [vmem:[#allocation7 + $0x60] sm:$0xff]  ;;  %v77_v13 = vld [vmem:[#allocation5 + $0x38] sm:$0xff] }
  0x2a   :  { %414 = vmatprep.subr.mxu0 %v83_v2  ;;  %455 = vmatpush3.msra.mxu1 %v221_v7  ;;  %v217_v14 = vld [vmem:[#allocation7 + $0x58] sm:$0xff]  ;;  %v76_v15 = vld [vmem:[#allocation5 + $0x30] sm:$0xff]  ;;  %v75_v17 = vld [vmem:[#allocation5 + $0x28] sm:$0xff] }
  0x2b   :  { %415 = vmatpush3.msra.mxu0 %v83_v2  ;;  %456 = vmatprep.subr.mxu1 %v220_v8  ;;  %v216_v16 = vld [vmem:[#allocation7 + $0x50] sm:$0xff]  ;;  %v215_v18 = vld [vmem:[#allocation7 + $0x48] sm:$0xff]  ;;  %v74_v19 = vld [vmem:[#allocation5 + $0x20] sm:$0xff] }
  0x2c   :  { %416 = vmatprep.subr.mxu0 %v82_v3  ;;  %457 = vmatpush3.msra.mxu1 %v220_v8  ;;  %v214_v20 = vld [vmem:[#allocation7 + $0x40] sm:$0xff]  ;;  %v73_v21 = vld [vmem:[#allocation5 + $0x18] sm:$0xff]  ;;  %v72_v23 = vld [vmem:[#allocation5 + $0x10] sm:$0xff] }
  0x2d   :  { %417 = vmatpush3.msra.mxu0 %v82_v3  ;;  %458 = vmatprep.subr.mxu1 %v219_v10  ;;  %v213_v22 = vld [vmem:[#allocation7 + $0x38] sm:$0xff]  ;;  %v212_v24 = vld [vmem:[#allocation7 + $0x30] sm:$0xff]  ;;  %v71_v25 = vld [vmem:[#allocation5 + $0x8] sm:$0xff] }
  0x2e   :  { %418 = vmatprep.subr.mxu0 %v81_v5  ;;  %459 = vmatpush3.msra.mxu1 %v219_v10  ;;  %v211_v26 = vld [vmem:[#allocation7 + $0x28] sm:$0xff]  ;;  %v70_v27 = vld [vmem:[#allocation5] sm:$0xff]  ;;  %v64_v30 = vld [vmem:[#allocation2 + $0x10] sm:$0xff] }
  0x2f   :  { %419 = vmatpush3.msra.mxu0 %v81_v5  ;;  %460 = vmatprep.subr.mxu1 %v218_v12  ;;  %v210_v28 = vld [vmem:[#allocation7 + $0x20] sm:$0xff]  ;;  %v63_v29 = vld [vmem:[#allocation2 + $0x8] sm:$0xff]  ;;  %v65_v31 = vld [vmem:[#allocation2 + $0x18] sm:$0xff] }
  0x30   :  { %420 = vmatprep.subr.mxu0 %v80_v6  ;;  %461 = vmatpush3.msra.mxu1 %v218_v12  ;;  %v66_v32 = vld [vmem:[#allocation2 + $0x20] sm:$0xff]  ;;  %v67_v33 = vld [vmem:[#allocation2 + $0x28] sm:$0xff]  ;;  %v68_v34 = vld [vmem:[#allocation2 + $0x30] sm:$0xff] }
  0x31   :  { %421 = vmatpush3.msra.mxu0 %v80_v6  ;;  %462 = vmatprep.subr.mxu1 %v217_v14  ;;  %v69_v35 = vld [vmem:[#allocation2 + $0x38] sm:$0xff]  ;;  %v208_v37 = vld [vmem:[#allocation7 + $0x10] sm:$0xff]  ;;  %v207_v38 = vld [vmem:[#allocation7 + $0x8] sm:$0xff] }
  0x32   :  { %422 = vmatprep.subr.mxu0 %v79_v9  ;;  %463 = vmatpush3.msra.mxu1 %v217_v14  ;;  %v209_v36 = vld [vmem:[#allocation7 + $0x18] sm:$0xff]  ;;  %v206_v39 = vld [vmem:[#allocation7] sm:$0xff] }
  0x33   :  { %423 = vmatpush3.msra.mxu0 %v79_v9  ;;  %464 = vmatprep.subr.mxu1 %v216_v16  ;;  %v360_v40 = vld [vmem:[%s658_s2] ss:$0 sm:$0xff] }
  0x34   :  { %424 = vmatprep.subr.mxu0 %v78_v11  ;;  %465 = vmatpush3.msra.mxu1 %v216_v16  ;;  %v361_v1 = vld [vmem:[%s660_s4] ss:$0 sm:$0xff]  ;;  %s347_s4 = sshll.u32 %s595_s10, 4  ;;  %s348_s4 = int_to_ptr.vmem [resolvable:$true] %s347_s4 }
  0x35   :  { %425 = vmatpush3.msra.mxu0 %v78_v11  ;;  %466 = vmatprep.subr.mxu1 %v215_v18  ;;  %s564_s11 = scalar_lea.vmem %s348_s4, 1024  ;;  %p569_p2 = scmp.lt.s32.totalorder %s348_s4, %s348_s4 }
  0x36   :  { %426 = vmatprep.subr.mxu0 %v77_v13  ;;  %467 = vmatpush3.msra.mxu1 %v215_v18  ;;  %p565_p1 = scmp.ne.s32.totalorder %s348_s4, %s564_s11  ;;  %p570_p3 = scmp.lt.s32.totalorder %s564_s11, %s564_s11 }
  0x37   :  { %427 = vmatpush3.msra.mxu0 %v77_v13  ;;  %468 = vmatprep.subr.mxu1 %v214_v20 }
  0x38   :  { %428 = vmatprep.subr.mxu0 %v76_v15  ;;  %469 = vmatpush3.msra.mxu1 %v214_v20  ;;  %p571_p4 = por %p570_p3, %p569_p2 }
  0x39   :  { %429 = vmatpush3.msra.mxu0 %v76_v15  ;;  %470 = vmatprep.subr.mxu1 %v213_v22 }
  0x3a   :  { %430 = vmatprep.subr.mxu0 %v75_v17  ;;  %471 = vmatpush3.msra.mxu1 %v213_v22  ;;  %p572_p5 = pnand %p571_p4, %p565_p1 }
  0x3b   :  { %431 = vmatpush3.msra.mxu0 %v75_v17  ;;  %472 = vmatprep.subr.mxu1 %v212_v24 }
  0x3c   :  { %432 = vmatprep.subr.mxu0 %v74_v19  ;;  %473 = vmatpush3.msra.mxu1 %v212_v24 }
  0x3d   :  { %433 = vmatpush3.msra.mxu0 %v74_v19  ;;  %474 = vmatprep.subr.mxu1 %v211_v26 }
  0x3e   :  { %434 = vmatprep.subr.mxu0 %v73_v21  ;;  %475 = vmatpush3.msra.mxu1 %v211_v26 }
  0x3f   :  { %435 = vmatpush3.msra.mxu0 %v73_v21  ;;  %476 = vmatprep.subr.mxu1 %v210_v28 }
  0x40   :  { %436 = vmatprep.subr.mxu0 %v72_v23  ;;  %477 = vmatpush3.msra.mxu1 %v210_v28 }
  0x41   :  { %437 = vmatpush3.msra.mxu0 %v72_v23  ;;  %478 = vmatprep.subr.mxu1 %v209_v36 }
  0x42   :  { %438 = vmatprep.subr.mxu0 %v71_v25  ;;  %479 = vmatpush3.msra.mxu1 %v209_v36 }
  0x43   :  { %439 = vmatpush3.msra.mxu0 %v71_v25  ;;  %480 = vmatprep.subr.mxu1 %v208_v37 }
  0x44   :  { %440 = vmatprep.subr.mxu0 %v70_v27  ;;  %481 = vmatpush3.msra.mxu1 %v208_v37 }
  0x45   :  { %441 = vmatpush3.msra.mxu0 %v70_v27  ;;  %482 = vmatprep.subr.mxu1 %v207_v38 }
  0x46   :  { %443 = vmatmul.mubr.f32.vlgmr.msra.gmra.mxu0 %v63_v29  ;;  %483 = vmatpush3.msra.mxu1 %v207_v38 }
  0x47   :  { %445 = vmatprep.mubr.f32.mxu0 %v64_v30  ;;  %484 = vmatprep.subr.mxu1 %v206_v39 }
  0x48   :  { %485 = vmatpush3.msra.mxu1 %v206_v39 }
  0x4a   :  { %446 = vmatmul.mubr.f32.gmra.mxu0 %v65_v31 }
  0x4b   :  { %448 = vmatprep.mubr.f32.mxu0 %v66_v32 }
  0x4e   :  { %449 = vmatmul.mubr.f32.gmra.mxu0 %v67_v33 }
  0x4f   :  { %451 = vmatprep.mubr.f32.mxu0 %v68_v34 }
  0x52   :  { %452 = vmatmul.mubr.f32.gmra.mxu0 %v69_v35 }
 0x106   :  { %v444_v41 = vpop.f32.mrf.mxu0 }
 0x107   :  { %v165_v42 = vadd.f32 %v444_v41, %v360_v40 }
 0x108   :  { %v159_v43 = vpop.f32.mrf.mxu0 }
 0x109   :  { %v160_v44 = vadd.f32 %v360_v40, %v159_v43  ;;  %v199_v47 = vmax.f32 %v165_v42, 0.0 }
 0x10a   :  { %v447_v45 = vpop.f32.mrf.mxu0 }
 0x10b   :  { %v198_v46 = vmax.f32 %v160_v44, 0.0  ;;  %v175_v48 = vadd.f32 %v447_v45, %v360_v40 }
 0x10c   :  { %v169_v49 = vpop.f32.mrf.mxu0 }
 0x10d   :  { %v170_v50 = vadd.f32 %v360_v40, %v169_v49  ;;  %486 = vmatprep.mubr.f32.mxu1 %v198_v46  ;;  %v201_v53 = vmax.f32 %v175_v48, 0.0 }
 0x10e   :  { %v450_v51 = vpop.f32.mrf.mxu0  ;;  %487 = vmatmul.mubr.f32.vlgmr.msra.gmra.mxu1 %v199_v47 }
 0x10f   :  { %v200_v52 = vmax.f32 %v170_v50, 0.0  ;;  %v185_v54 = vadd.f32 %v450_v51, %v360_v40 }
 0x110   :  { %v179_v55 = vpop.f32.mrf.mxu0 }
 0x111   :  { %v180_v56 = vadd.f32 %v360_v40, %v179_v55  ;;  %489 = vmatprep.mubr.f32.mxu1 %v200_v52  ;;  %v203_v59 = vmax.f32 %v185_v54, 0.0 }
 0x112   :  { %v453_v57 = vpop.f32.mrf.mxu0  ;;  %490 = vmatmul.mubr.f32.gmra.mxu1 %v201_v53 }
 0x113   :  { %v202_v58 = vmax.f32 %v180_v56, 0.0  ;;  %v195_v60 = vadd.f32 %v453_v57, %v360_v40 }
 0x114   :  { %v189_v61 = vpop.f32.mrf.mxu0 }
 0x115   :  { %v190_v62 = vadd.f32 %v360_v40, %v189_v61  ;;  %492 = vmatprep.mubr.f32.mxu1 %v202_v58  ;;  %v205_v0 = vmax.f32 %v195_v60, 0.0 }
 0x116   :  { %493 = vmatmul.mubr.f32.gmra.mxu1 %v203_v59 }
 0x117   :  { %v204_v63 = vmax.f32 %v190_v62, 0.0 }
 0x119   :  { %495 = vmatprep.mubr.f32.mxu1 %v204_v63 }
 0x11a   :  { %496 = vmatmul.mubr.f32.gmra.mxu1 %v205_v0 }
 0x1ce   :  { %v488_v2 = vpop.f32.mrf.mxu1 }
 0x1cf   :  { %v301_v3 = vadd.f32 %v488_v2, %v361_v1 }
 0x1d0   :  { %v295_v4 = vpop.f32.mrf.mxu1 }
 0x1d1   :  { %335 = vst [vmem:[#allocation8 + $0x8] sm:$0xff] %v301_v3  ;;  %v296_v5 = vadd.f32 %v361_v1, %v295_v4 }
 0x1d2   :  { %v491_v6 = vpop.f32.mrf.mxu1 }
 0x1d3   :  { %334 = vst [vmem:[#allocation8] sm:$0xff] %v296_v5  ;;  %v311_v7 = vadd.f32 %v491_v6, %v361_v1 }
 0x1d4   :  { %v305_v8 = vpop.f32.mrf.mxu1 }
 0x1d5   :  { %337 = vst [vmem:[#allocation8 + $0x18] sm:$0xff] %v311_v7  ;;  %v306_v9 = vadd.f32 %v361_v1, %v305_v8 }
 0x1d6   :  { %v494_v10 = vpop.f32.mrf.mxu1 }
 0x1d7   :  { %336 = vst [vmem:[#allocation8 + $0x10] sm:$0xff] %v306_v9  ;;  %v321_v11 = vadd.f32 %v494_v10, %v361_v1 }
 0x1d8   :  { %v315_v12 = vpop.f32.mrf.mxu1 }
 0x1d9   :  { %339 = vst [vmem:[#allocation8 + $0x28] sm:$0xff] %v321_v11  ;;  %v316_v13 = vadd.f32 %v361_v1, %v315_v12 }
 0x1da   :  { %v497_v14 = vpop.f32.mrf.mxu1 }
 0x1db   :  { %338 = vst [vmem:[#allocation8 + $0x20] sm:$0xff] %v316_v13  ;;  %v331_v15 = vadd.f32 %v497_v14, %v361_v1 }
 0x1dc   :  { %v325_v16 = vpop.f32.mrf.mxu1 }
 0x1dd   :  { %341 = vst [vmem:[#allocation8 + $0x38] sm:$0xff] %v331_v15  ;;  %v326_v17 = vadd.f32 %v361_v1, %v325_v16 }
 0x1df   :  { %340 = vst [vmem:[#allocation8 + $0x30] sm:$0xff] %v326_v17 }
 0x1e0   :  { %575 = shalt.err (!%p572_p5)
}
 0x1e1   :  { %353 = dma.vmem_to_hbm [thread:$0]  %s348_s4, 1024, %s661_s5, [#allocation4], %s592_s23, %s592_s23, %s593_s24  }
 0x1e2   :  { %588 = dma.done.wait [#allocation4], 1024  }
 0x1e3   :  { %589 = vsyncadd [#allocation4], 4294966272 }
 0x1e4   :  { %357 = vsyncpa [#allocation3], 1 }
 0x1e5   :  { %358 = vsyncpa [#allocation6], 1 }
 0x1e6   :  { %359 = vsyncpa [#allocation4], 1 }

// kernel: tpu_custom_call.1
= control target key start
LH: loop header
LB: loop body
LE: loop exit
PB: predicated region body
PF: predicated region fallthrough
CT: control target
= control target key end

     0   :  { %10 = vsyncpa [#allocation3], 0  ;;  %s656_s0 = inlined_call_operand.hbm [shape: f32[64,128], index: 0, kind: input, shape index: {}]   ;;  %s657_s1 = inlined_call_operand.hbm [shape: f32[128,128], index: 1, kind: input, shape index: {}]   ;;  %s658_s2 = inlined_call_operand.vmem [shape: f32[1,128], index: 2, kind: input, shape index: {}]   ;;  %s659_s3 = inlined_call_operand.hbm [shape: f32[128,128], index: 3, kind: input, shape index: {}]   ;;  %s660_s4 = inlined_call_operand.vmem [shape: f32[1,128], index: 4, kind: input, shape index: {}]   ;;  %s661_s5 = inlined_call_operand.hbm [shape: f32[64,128], index: 5, kind: output, shape index: {}]  }
   0x1   :  { %11 = vsyncpa [#allocation6], 0 }
   0x2   :  { %12 = vsyncpa [#allocation4], 0  ;;  %s590_s18 = smov [#allocation5]   ;;  %s591_s20 = smov [#allocation2]  }
   0x3   :  { %s30_s19 = sshll.u32 %s590_s18, 4  ;;  %s18_s21 = sshll.u32 %s591_s20, 4  ;;  %s31_s19 = int_to_ptr.vmem [resolvable:$true] %s30_s19  ;;  %s19_s21 = int_to_ptr.vmem [resolvable:$true] %s18_s21 }
   0x4   :  { %s512_s22 = scalar_lea.vmem %s31_s19, 2048  ;;  %p517_p1 = scmp.lt.s32.totalorder %s31_s19, %s31_s19 }
   0x5   :  { %p513_p0 = scmp.ne.s32.totalorder %s31_s19, %s512_s22  ;;  %p518_p2 = scmp.lt.s32.totalorder %s512_s22, %s512_s22 }
   0x7   :  { %p519_p3 = por %p518_p2, %p517_p1 }
   0x9   :  { %p520_p4 = pnand %p519_p3, %p513_p0 }
   0xb   :  { %523 = shalt.err (!%p520_p4)
}
   0xc   :  { %s592_s23 = smov 128   ;;  %s593_s24 = smov 8  }
   0xd   :  { %36 = dma.hbm_to_vmem [thread:$0]  %s657_s1, 2048, %s31_s19, [#allocation6], %s592_s23, %s592_s23, %s593_s24  }
   0xe   :  { %s532_s27 = scalar_lea.vmem %s19_s21, 1024  ;;  %p537_p6 = scmp.lt.s32.totalorder %s19_s21, %s19_s21 }
   0xf   :  { %p533_p5 = scmp.ne.s32.totalorder %s19_s21, %s532_s27  ;;  %p538_p7 = scmp.lt.s32.totalorder %s532_s27, %s532_s27 }
  0x11   :  { %p539_p8 = por %p538_p7, %p537_p6 }
  0x13   :  { %p540_p9 = pnand %p539_p8, %p533_p5 }
  0x15   :  { %543 = shalt.err (!%p540_p9)
}
  0x16   :  { %24 = dma.hbm_to_vmem [thread:$0]  %s656_s0, 1024, %s19_s21, [#allocation3], %s592_s23, %s592_s23, %s593_s24  }
  0x17   :  { %s594_s30 = smov [#allocation7]  }
  0x18   :  { %s44_s6 = sshll.u32 %s594_s30, 4  ;;  %s45_s6 = int_to_ptr.vmem [resolvable:$true] %s44_s6 }
  0x19   :  { %s552_s7 = scalar_lea.vmem %s45_s6, 2048  ;;  %p557_p11 = scmp.lt.s32.totalorder %s45_s6, %s45_s6 }
  0x1a   :  { %p553_p10 = scmp.ne.s32.totalorder %s45_s6, %s552_s7  ;;  %p558_p12 = scmp.lt.s32.totalorder %s552_s7, %s552_s7 }
  0x1c   :  { %p559_p13 = por %p558_p12, %p557_p11 }
  0x1e   :  { %p560_p0 = pnand %p559_p13, %p553_p10 }
  0x20   :  { %563 = shalt.err (!%p560_p0)
}
  0x21   :  { %50 = dma.hbm_to_vmem [thread:$0]  %s659_s3, 2048, %s45_s6, [#allocation6], %s592_s23, %s592_s23, %s593_s24  }
  0x22   :  { %584 = dma.done.wait [#allocation3], 1024  }
  0x23   :  { %585 = vsyncadd [#allocation3], 4294966272 }
  0x24   :  { %586 = dma.done.wait [#allocation6], 4096  }
  0x25   :  { %587 = vsyncadd [#allocation6], 4294963200  ;;  %v85_v0 = vld [vmem:[#allocation5 + $0x78] sm:$0xff]  ;;  %v84_v1 = vld [vmem:[#allocation5 + $0x70] sm:$0xff]  ;;  %s595_s10 = smov [#allocation8]  }
  0x26   :  { %410 = vmatprep.subr.mxu0 %v85_v0  ;;  %v83_v2 = vld [vmem:[#allocation5 + $0x68] sm:$0xff]  ;;  %v82_v3 = vld [vmem:[#allocation5 + $0x60] sm:$0xff]  ;;  %v81_v5 = vld [vmem:[#allocation5 + $0x58] sm:$0xff] }
  0x27   :  { %411 = vmatpush3.msra.mxu0 %v85_v0  ;;  %v62_v4 = vld [vmem:[#allocation2] sm:$0xff]  ;;  %v80_v6 = vld [vmem:[#allocation5 + $0x50] sm:$0xff]  ;;  %v221_v7 = vld [vmem:[#allocation7 + $0x78] sm:$0xff] }
  0x28   :  { %412 = vmatprep.subr.mxu0 %v84_v1  ;;  %442 = vmatprep.mubr.f32.mxu0 %v62_v4  ;;  %v220_v8 = vld [vmem:[#allocation7 + $0x70] sm:$0xff]  ;;  %v79_v9 = vld [vmem:[#allocation5 + $0x48] sm:$0xff]  ;;  %v78_v11 = vld [vmem:[#allocation5 + $0x40] sm:$0xff] }
  0x29   :  { %413 = vmatpush3.msra.mxu0 %v84_v1  ;;  %454 = vmatprep.subr.mxu1 %v221_v7  ;;  %v219_v10 = vld [vmem:[#allocation7 + $0x68] sm:$0xff]  ;;  %v218_v12 = vld [vmem:[#allocation7 + $0x60] sm:$0xff]  ;;  %v77_v13 = vld [vmem:[#allocation5 + $0x38] sm:$0xff] }
  0x2a   :  { %414 = vmatprep.subr.mxu0 %v83_v2  ;;  %455 = vmatpush3.msra.mxu1 %v221_v7  ;;  %v217_v14 = vld [vmem:[#allocation7 + $0x58] sm:$0xff]  ;;  %v76_v15 = vld [vmem:[#allocation5 + $0x30] sm:$0xff]  ;;  %v75_v17 = vld [vmem:[#allocation5 + $0x28] sm:$0xff] }
  0x2b   :  { %415 = vmatpush3.msra.mxu0 %v83_v2  ;;  %456 = vmatprep.subr.mxu1 %v220_v8  ;;  %v216_v16 = vld [vmem:[#allocation7 + $0x50] sm:$0xff]  ;;  %v215_v18 = vld [vmem:[#allocation7 + $0x48] sm:$0xff]  ;;  %v74_v19 = vld [vmem:[#allocation5 + $0x20] sm:$0xff] }
  0x2c   :  { %416 = vmatprep.subr.mxu0 %v82_v3  ;;  %457 = vmatpush3.msra.mxu1 %v220_v8  ;;  %v214_v20 = vld [vmem:[#allocation7 + $0x40] sm:$0xff]  ;;  %v73_v21 = vld [vmem:[#allocation5 + $0x18] sm:$0xff]  ;;  %v72_v23 = vld [vmem:[#allocation5 + $0x10] sm:$0xff] }
  0x2d   :  { %417 = vmatpush3.msra.mxu0 %v82_v3  ;;  %458 = vmatprep.subr.mxu1 %v219_v10  ;;  %v213_v22 = vld [vmem:[#allocation7 + $0x38] sm:$0xff]  ;;  %v212_v24 = vld [vmem:[#allocation7 + $0x30] sm:$0xff]  ;;  %v71_v25 = vld [vmem:[#allocation5 + $0x8] sm:$0xff] }
  0x2e   :  { %418 = vmatprep.subr.mxu0 %v81_v5  ;;  %459 = vmatpush3.msra.mxu1 %v219_v10  ;;  %v211_v26 = vld [vmem:[#allocation7 + $0x28] sm:$0xff]  ;;  %v70_v27 = vld [vmem:[#allocation5] sm:$0xff]  ;;  %v64_v30 = vld [vmem:[#allocation2 + $0x10] sm:$0xff] }
  0x2f   :  { %419 = vmatpush3.msra.mxu0 %v81_v5  ;;  %460 = vmatprep.subr.mxu1 %v218_v12  ;;  %v210_v28 = vld [vmem:[#allocation7 + $0x20] sm:$0xff]  ;;  %v63_v29 = vld [vmem:[#allocation2 + $0x8] sm:$0xff]  ;;  %v65_v31 = vld [vmem:[#allocation2 + $0x18] sm:$0xff] }
  0x30   :  { %420 = vmatprep.subr.mxu0 %v80_v6  ;;  %461 = vmatpush3.msra.mxu1 %v218_v12  ;;  %v66_v32 = vld [vmem:[#allocation2 + $0x20] sm:$0xff]  ;;  %v67_v33 = vld [vmem:[#allocation2 + $0x28] sm:$0xff]  ;;  %v68_v34 = vld [vmem:[#allocation2 + $0x30] sm:$0xff] }
  0x31   :  { %421 = vmatpush3.msra.mxu0 %v80_v6  ;;  %462 = vmatprep.subr.mxu1 %v217_v14  ;;  %v69_v35 = vld [vmem:[#allocation2 + $0x38] sm:$0xff]  ;;  %v208_v37 = vld [vmem:[#allocation7 + $0x10] sm:$0xff]  ;;  %v207_v38 = vld [vmem:[#allocation7 + $0x8] sm:$0xff] }
  0x32   :  { %422 = vmatprep.subr.mxu0 %v79_v9  ;;  %463 = vmatpush3.msra.mxu1 %v217_v14  ;;  %v209_v36 = vld [vmem:[#allocation7 + $0x18] sm:$0xff]  ;;  %v206_v39 = vld [vmem:[#allocation7] sm:$0xff] }
  0x33   :  { %423 = vmatpush3.msra.mxu0 %v79_v9  ;;  %464 = vmatprep.subr.mxu1 %v216_v16  ;;  %v360_v40 = vld [vmem:[%s658_s2] ss:$0 sm:$0xff] }
  0x34   :  { %424 = vmatprep.subr.mxu0 %v78_v11  ;;  %465 = vmatpush3.msra.mxu1 %v216_v16  ;;  %v361_v1 = vld [vmem:[%s660_s4] ss:$0 sm:$0xff]  ;;  %s347_s4 = sshll.u32 %s595_s10, 4  ;;  %s348_s4 = int_to_ptr.vmem [resolvable:$true] %s347_s4 }
  0x35   :  { %425 = vmatpush3.msra.mxu0 %v78_v11  ;;  %466 = vmatprep.subr.mxu1 %v215_v18  ;;  %s564_s11 = scalar_lea.vmem %s348_s4, 1024  ;;  %p569_p2 = scmp.lt.s32.totalorder %s348_s4, %s348_s4 }
  0x36   :  { %426 = vmatprep.subr.mxu0 %v77_v13  ;;  %467 = vmatpush3.msra.mxu1 %v215_v18  ;;  %p565_p1 = scmp.ne.s32.totalorder %s348_s4, %s564_s11  ;;  %p570_p3 = scmp.lt.s32.totalorder %s564_s11, %s564_s11 }
  0x37   :  { %427 = vmatpush3.msra.mxu0 %v77_v13  ;;  %468 = vmatprep.subr.mxu1 %v214_v20 }
  0x38   :  { %428 = vmatprep.subr.mxu0 %v76_v15  ;;  %469 = vmatpush3.msra.mxu1 %v214_v20  ;;  %p571_p4 = por %p570_p3, %p569_p2 }
  0x39   :  { %429 = vmatpush3.msra.mxu0 %v76_v15  ;;  %470 = vmatprep.subr.mxu1 %v213_v22 }
  0x3a   :  { %430 = vmatprep.subr.mxu0 %v75_v17  ;;  %471 = vmatpush3.msra.mxu1 %v213_v22  ;;  %p572_p5 = pnand %p571_p4, %p565_p1 }
  0x3b   :  { %431 = vmatpush3.msra.mxu0 %v75_v17  ;;  %472 = vmatprep.subr.mxu1 %v212_v24 }
  0x3c   :  { %432 = vmatprep.subr.mxu0 %v74_v19  ;;  %473 = vmatpush3.msra.mxu1 %v212_v24 }
  0x3d   :  { %433 = vmatpush3.msra.mxu0 %v74_v19  ;;  %474 = vmatprep.subr.mxu1 %v211_v26 }
  0x3e   :  { %434 = vmatprep.subr.mxu0 %v73_v21  ;;  %475 = vmatpush3.msra.mxu1 %v211_v26 }
  0x3f   :  { %435 = vmatpush3.msra.mxu0 %v73_v21  ;;  %476 = vmatprep.subr.mxu1 %v210_v28 }
  0x40   :  { %436 = vmatprep.subr.mxu0 %v72_v23  ;;  %477 = vmatpush3.msra.mxu1 %v210_v28 }
  0x41   :  { %437 = vmatpush3.msra.mxu0 %v72_v23  ;;  %478 = vmatprep.subr.mxu1 %v209_v36 }
  0x42   :  { %438 = vmatprep.subr.mxu0 %v71_v25  ;;  %479 = vmatpush3.msra.mxu1 %v209_v36 }
  0x43   :  { %439 = vmatpush3.msra.mxu0 %v71_v25  ;;  %480 = vmatprep.subr.mxu1 %v208_v37 }
  0x44   :  { %440 = vmatprep.subr.mxu0 %v70_v27  ;;  %481 = vmatpush3.msra.mxu1 %v208_v37 }
  0x45   :  { %441 = vmatpush3.msra.mxu0 %v70_v27  ;;  %482 = vmatprep.subr.mxu1 %v207_v38 }
  0x46   :  { %443 = vmatmul.mubr.f32.vlgmr.msra.gmra.mxu0 %v63_v29  ;;  %483 = vmatpush3.msra.mxu1 %v207_v38 }
  0x47   :  { %445 = vmatprep.mubr.f32.mxu0 %v64_v30  ;;  %484 = vmatprep.subr.mxu1 %v206_v39 }
  0x48   :  { %485 = vmatpush3.msra.mxu1 %v206_v39 }
  0x4a   :  { %446 = vmatmul.mubr.f32.gmra.mxu0 %v65_v31 }
  0x4b   :  { %448 = vmatprep.mubr.f32.mxu0 %v66_v32 }
  0x4e   :  { %449 = vmatmul.mubr.f32.gmra.mxu0 %v67_v33 }
  0x4f   :  { %451 = vmatprep.mubr.f32.mxu0 %v68_v34 }
  0x52   :  { %452 = vmatmul.mubr.f32.gmra.mxu0 %v69_v35 }
 0x106   :  { %v444_v41 = vpop.f32.mrf.mxu0 }
 0x107   :  { %v165_v42 = vadd.f32 %v444_v41, %v360_v40 }
 0x108   :  { %v159_v43 = vpop.f32.mrf.mxu0 }
 0x109   :  { %v160_v44 = vadd.f32 %v360_v40, %v159_v43  ;;  %v199_v47 = vmax.f32 %v165_v42, 0.0 }
 0x10a   :  { %v447_v45 = vpop.f32.mrf.mxu0 }
 0x10b   :  { %v198_v46 = vmax.f32 %v160_v44, 0.0  ;;  %v175_v48 = vadd.f32 %v447_v45, %v360_v40 }
 0x10c   :  { %v169_v49 = vpop.f32.mrf.mxu0 }
 0x10d   :  { %v170_v50 = vadd.f32 %v360_v40, %v169_v49  ;;  %486 = vmatprep.mubr.f32.mxu1 %v198_v46  ;;  %v201_v53 = vmax.f32 %v175_v48, 0.0 }
 0x10e   :  { %v450_v51 = vpop.f32.mrf.mxu0  ;;  %487 = vmatmul.mubr.f32.vlgmr.msra.gmra.mxu1 %v199_v47 }
 0x10f   :  { %v200_v52 = vmax.f32 %v170_v50, 0.0  ;;  %v185_v54 = vadd.f32 %v450_v51, %v360_v40 }
 0x110   :  { %v179_v55 = vpop.f32.mrf.mxu0 }
 0x111   :  { %v180_v56 = vadd.f32 %v360_v40, %v179_v55  ;;  %489 = vmatprep.mubr.f32.mxu1 %v200_v52  ;;  %v203_v59 = vmax.f32 %v185_v54, 0.0 }
 0x112   :  { %v453_v57 = vpop.f32.mrf.mxu0  ;;  %490 = vmatmul.mubr.f32.gmra.mxu1 %v201_v53 }
 0x113   :  { %v202_v58 = vmax.f32 %v180_v56, 0.0  ;;  %v195_v60 = vadd.f32 %v453_v57, %v360_v40 }
 0x114   :  { %v189_v61 = vpop.f32.mrf.mxu0 }
 0x115   :  { %v190_v62 = vadd.f32 %v360_v40, %v189_v61  ;;  %492 = vmatprep.mubr.f32.mxu1 %v202_v58  ;;  %v205_v0 = vmax.f32 %v195_v60, 0.0 }
 0x116   :  { %493 = vmatmul.mubr.f32.gmra.mxu1 %v203_v59 }
 0x117   :  { %v204_v63 = vmax.f32 %v190_v62, 0.0 }
 0x119   :  { %495 = vmatprep.mubr.f32.mxu1 %v204_v63 }
 0x11a   :  { %496 = vmatmul.mubr.f32.gmra.mxu1 %v205_v0 }
 0x1ce   :  { %v488_v2 = vpop.f32.mrf.mxu1 }
 0x1cf   :  { %v301_v3 = vadd.f32 %v488_v2, %v361_v1 }
 0x1d0   :  { %v295_v4 = vpop.f32.mrf.mxu1 }
 0x1d1   :  { %335 = vst [vmem:[#allocation8 + $0x8] sm:$0xff] %v301_v3  ;;  %v296_v5 = vadd.f32 %v361_v1, %v295_v4 }
 0x1d2   :  { %v491_v6 = vpop.f32.mrf.mxu1 }
 0x1d3   :  { %334 = vst [vmem:[#allocation8] sm:$0xff] %v296_v5  ;;  %v311_v7 = vadd.f32 %v491_v6, %v361_v1 }
 0x1d4   :  { %v305_v8 = vpop.f32.mrf.mxu1 }
 0x1d5   :  { %337 = vst [vmem:[#allocation8 + $0x18] sm:$0xff] %v311_v7  ;;  %v306_v9 = vadd.f32 %v361_v1, %v305_v8 }
 0x1d6   :  { %v494_v10 = vpop.f32.mrf.mxu1 }
 0x1d7   :  { %336 = vst [vmem:[#allocation8 + $0x10] sm:$0xff] %v306_v9  ;;  %v321_v11 = vadd.f32 %v494_v10, %v361_v1 }
 0x1d8   :  { %v315_v12 = vpop.f32.mrf.mxu1 }
 0x1d9   :  { %339 = vst [vmem:[#allocation8 + $0x28] sm:$0xff] %v321_v11  ;;  %v316_v13 = vadd.f32 %v361_v1, %v315_v12 }
 0x1da   :  { %v497_v14 = vpop.f32.mrf.mxu1 }
 0x1db   :  { %338 = vst [vmem:[#allocation8 + $0x20] sm:$0xff] %v316_v13  ;;  %v331_v15 = vadd.f32 %v497_v14, %v361_v1 }
 0x1dc   :  { %v325_v16 = vpop.f32.mrf.mxu1 }
 0x1dd   :  { %341 = vst [vmem:[#allocation8 + $0x38] sm:$0xff] %v331_v15  ;;  %v326_v17 = vadd.f32 %v361_v1, %v325_v16 }
 0x1df   :  { %340 = vst [vmem:[#allocation8 + $0x30] sm:$0xff] %v326_v17 }
 0x1e0   :  { %575 = shalt.err (!%p572_p5)
}
 0x1e1   :  { %353 = dma.vmem_to_hbm [thread:$0]  %s348_s4, 1024, %s661_s5, [#allocation4], %s592_s23, %s592_s23, %s593_s24  }
 0x1e2   :  { %588 = dma.done.wait [#allocation4], 1024  }
 0x1e3   :  { %589 = vsyncadd [#allocation4], 4294966272 }
 0x1e4   :  { %357 = vsyncpa [#allocation3], 1 }
 0x1e5   :  { %358 = vsyncpa [#allocation6], 1 }
 0x1e6   :  { %359 = vsyncpa [#allocation4], 1 }

</bundles_post_ra>
